<compile_context>
chip_gen: v5e
topology: v5e:2x2
jax: 0.10.0
libtpu: 0.0.40
codegen_flags: <defaults>
</compile_context>

<pallas_src>
import functools

import jax
import jax.numpy as jnp
from jax.experimental import pallas as pl
from jax.experimental.pallas import tpu as pltpu


def _round_up(n, m):
    return ((n + m - 1) // m) * m


def chess_ppo_kernel(x_ref, w1_ref, b1_ref, w2_ref, b2_ref, out_ref, *,
                     output_size):
    x = x_ref[...]                                                   # [tB, I]

    # ---- fused first layer (policy || value): single MXU pass ----
    h = jnp.dot(x, w1_ref[...], preferred_element_type=jnp.float32) + b1_ref[...]
    h = jnp.maximum(h, 0.0)                                          # ReLU, [tB, 2H]

    # ---- block-diagonal second layer: cols [0,O) = logits, col O = value,
    #      cols (O, Npad) = zero padding ----
    z = jnp.dot(h.astype(w2_ref.dtype), w2_ref[...],
                preferred_element_type=jnp.float32) + b2_ref[...]    # [tB, Npad]

    # Masked softmax over the policy columns only; value/pad columns pass through.
    col = jax.lax.broadcasted_iota(jnp.int32, z.shape, 1)
    is_policy = col < output_size
    zm = jnp.where(is_policy, z, -jnp.inf)
    m = jnp.max(zm, axis=-1, keepdims=True)
    e = jnp.exp(zm - m)                           # value/pad columns -> exp(-inf) = 0
    denom = jnp.sum(e, axis=-1, keepdims=True)
    probs = e / denom                             # exact -> rows sum to 1 (f32 roundoff)

    out_ref[...] = jnp.where(is_policy, probs, z).astype(out_ref.dtype)


def pack_params(params, compute_dtype=jnp.float32):
    """Pack (w1p,b1p,w2p,b2p,w1v,b1v,w2v,b2v) into fused W1/b1 and lane-padded
    block-diagonal W2/b2."""
    (w1p, b1p, w2p, b2p, w1v, b1v, w2v, b2v) = params
    H = w1p.shape[1]
    O = w2p.shape[1]
    Npad = _round_up(O + 1, 128)                 # lane-dense output width

    w1 = jnp.concatenate([w1p, w1v], axis=1).astype(compute_dtype)         # [I, 2H]
    b1 = jnp.concatenate([b1p, b1v], axis=1).astype(jnp.float32)           # [1, 2H]

    w2 = jnp.zeros((2 * H, Npad), jnp.float32)
    w2 = w2.at[:H, :O].set(w2p)                                            # policy block
    w2 = w2.at[H:, O].set(w2v[:, 0])                                       # value block
    w2 = w2.astype(compute_dtype)                                          # [2H, Npad]

    b2 = jnp.zeros((1, Npad), jnp.float32)
    b2 = b2.at[:, :O].set(b2p)
    b2 = b2.at[:, O:O + 1].set(b2v)                                        # [1, Npad]
    return w1, b1, w2, b2, O, Npad


def chess_ppo_forward(x, params, *, compute_dtype=jnp.float32, batch_tile=512):
    """Returns (policy_probs [B,O], value [B,1]), matching the PyTorch forward."""
    w1, b1, w2, b2, O, Npad = pack_params(params, compute_dtype)
    B, I = x.shape
    H2 = w1.shape[1]
    x = x.astype(compute_dtype)

    # Batch tile: multiple of 8 (sublanes) when gridded, else the full batch.
    tB = B if B <= batch_tile else batch_tile
    grid = (pl.cdiv(B, tB),)

    # Weights/biases are full-array blocks (index_map -> (0,0)): DMA'd once,
    # resident in VMEM across the whole batch grid.  x / out stream per tile.
    # NOTE: at real chess action spaces (O ~ 2k-4.7k), size tB against v7x's
    # 64 MiB VMEM (output tile dominates: tB*Npad*4 bytes, double-buffered).
    in_specs = [
        pl.BlockSpec((tB, I), lambda i: (i, 0)),        # x
        pl.BlockSpec((I, H2), lambda i: (0, 0)),        # W1
        pl.BlockSpec((1, H2), lambda i: (0, 0)),        # b1
        pl.BlockSpec((H2, Npad), lambda i: (0, 0)),     # W2 (block-diagonal, padded)
        pl.BlockSpec((1, Npad), lambda i: (0, 0)),      # b2
    ]
    out_spec = pl.BlockSpec((tB, Npad), lambda i: (i, 0))

    out = pl.pallas_call(
        functools.partial(chess_ppo_kernel, output_size=O),
        out_shape=jax.ShapeDtypeStruct((B, Npad), jnp.float32),
        grid=grid,
        in_specs=in_specs,
        out_specs=out_spec,
        compiler_params=pltpu.CompilerParams(
            dimension_semantics=("parallel",)),          # 2 TCs on v7x
    )(x, w1, b1, w2, b2)

    probs = out[:, :O]
    value = out[:, O:O + 1]
    return probs, value


def init_params(key, input_size, hidden_size, output_size):
    """Deterministic init mimicking nn.Linear's uniform(-1/sqrt(fan_in), 1/sqrt(fan_in))."""
    ks = jax.random.split(key, 8)

    def lin(kw, kb, fan_in, fan_out):
        bound = 1.0 / jnp.sqrt(jnp.float32(fan_in))
        w = jax.random.uniform(kw, (fan_in, fan_out), jnp.float32, -bound, bound)
        b = jax.random.uniform(kb, (1, fan_out), jnp.float32, -bound, bound)
        return w, b

    w1p, b1p = lin(ks[0], ks[1], input_size, hidden_size)
    w2p, b2p = lin(ks[2], ks[3], hidden_size, output_size)
    w1v, b1v = lin(ks[4], ks[5], input_size, hidden_size)
    w2v, b2v = lin(ks[6], ks[7], hidden_size, 1)
    return (w1p, b1p, w2p, b2p, w1v, b1v, w2v, b2v)


def reference_forward(x, params):
    """Pure-JAX reference identical to the PyTorch forward."""
    (w1p, b1p, w2p, b2p, w1v, b1v, w2v, b2v) = params
    h_p = jnp.maximum(x @ w1p + b1p, 0.0)
    logits = h_p @ w2p + b2p
    probs = jax.nn.softmax(logits, axis=-1)
    h_v = jnp.maximum(x @ w1v + b1v, 0.0)
    value = h_v @ w2v + b2v
    return probs, value


if __name__ == "__main__":
    # Small shapes consistent with the module: a flattened chess-board-ish state.
    batch = 8
    input_size = 64      # e.g. 8x8 board features flattened
    hidden_size = 32
    output_size = 16     # action logits

    key = jax.random.PRNGKey(0)
    k_params, k_x = jax.random.split(key)
    params = init_params(k_params, input_size, hidden_size, output_size)
    x = jax.random.normal(k_x, (batch, input_size), jnp.float32)
    probs_ref, value_ref = reference_forward(x, params)

    # f32 path.
    probs, value = chess_ppo_forward(x, params, compute_dtype=jnp.float32)
    probs = jax.block_until_ready(probs)
    value = jax.block_until_ready(value)
    assert probs.shape == (batch, output_size)
    assert value.shape == (batch, 1)
    assert jnp.allclose(probs, probs_ref, atol=1e-3, rtol=1e-3)
    assert jnp.allclose(value, value_ref, atol=1e-3, rtol=1e-3)
    assert jnp.allclose(jnp.sum(probs, axis=-1), 1.0, atol=1e-3)

    # Exercise the batch grid (multiple tiles of 16 rows) in f32.
    big_b = 64
    xb = jax.random.normal(jax.random.PRNGKey(1), (big_b, input_size), jnp.float32)
    pb_ref, vb_ref = reference_forward(xb, params)
    pb, vb = chess_ppo_forward(xb, params, compute_dtype=jnp.float32, batch_tile=16)
    pb = jax.block_until_ready(pb)
    vb = jax.block_until_ready(vb)
    assert jnp.allclose(pb, pb_ref, atol=1e-3, rtol=1e-3)
    assert jnp.allclose(vb, vb_ref, atol=1e-3, rtol=1e-3)
    assert jnp.allclose(jnp.sum(pb, axis=-1), 1.0, atol=1e-3)

    # bf16 compute path (f32 accumulation) for v6e/v7x MXU throughput.
    probs_bf, value_bf = chess_ppo_forward(x, params, compute_dtype=jnp.bfloat16)
    probs_bf = jax.block_until_ready(probs_bf)
    value_bf = jax.block_until_ready(value_bf)
    assert jnp.allclose(probs_bf, probs_ref, atol=5e-2, rtol=5e-2)
    assert jnp.allclose(value_bf, value_ref, atol=5e-2, rtol=5e-2)
    assert jnp.allclose(jnp.sum(probs_bf, axis=-1), 1.0, atol=1e-3)

    print("KERNEL_OK")
</pallas_src>

<mosaic_0001>
module attributes {stable_mosaic.version = 11 : i64} {
  func.func @chess_ppo_kernel(%arg0: i32, %arg1: memref<8x64xf32, #tpu.memory_space<vmem>>, %arg2: memref<64x64xf32, #tpu.memory_space<vmem>>, %arg3: memref<1x64xf32, #tpu.memory_space<vmem>>, %arg4: memref<64x128xf32, #tpu.memory_space<vmem>>, %arg5: memref<1x128xf32, #tpu.memory_space<vmem>>, %arg6: memref<8x128xf32, #tpu.memory_space<vmem>>) attributes {dimension_semantics = [#tpu.dimension_semantics<parallel>], iteration_bounds = array<i64: 1>, scalar_prefetch = 0 : i64, scratch_operands = 0 : i64, tpu.core_type = #tpu.core_type<tc>, window_params = [{transform_indices = @transform_0, window_bounds = array<i64: 8, 64>}, {pipeline_mode = #tpu.pipeline_mode<synchronous>, transform_indices = @transform_1, window_bounds = array<i64: 64, 64>}, {pipeline_mode = #tpu.pipeline_mode<synchronous>, transform_indices = @transform_2, window_bounds = array<i64: 1, 64>}, {pipeline_mode = #tpu.pipeline_mode<synchronous>, transform_indices = @transform_3, window_bounds = array<i64: 64, 128>}, {pipeline_mode = #tpu.pipeline_mode<synchronous>, transform_indices = @transform_4, window_bounds = array<i64: 1, 128>}, {transform_indices = @transform_5, window_bounds = array<i64: 8, 128>}]} {
    %c0 = arith.constant 0 : index
    %c0_0 = arith.constant 0 : index
    %0 = vector.load %arg1[%c0, %c0_0] : memref<8x64xf32, #tpu.memory_space<vmem>>, vector<8x64xf32>
    %c0_1 = arith.constant 0 : index
    %c0_2 = arith.constant 0 : index
    %1 = vector.load %arg2[%c0_1, %c0_2] : memref<64x64xf32, #tpu.memory_space<vmem>>, vector<64x64xf32>
    %cst = arith.constant dense<0.000000e+00> : vector<8x64xf32>
    %2 = tpu.matmul %0, %1, %cst {dimension_numbers = #tpu.dot_dimension_numbers<[1], [0], [0], [1], [0, 0, 1, 1], [], []>} : vector<8x64xf32>, vector<64x64xf32>, vector<8x64xf32> -> vector<8x64xf32>
    %c0_3 = arith.constant 0 : index
    %c0_4 = arith.constant 0 : index
    %3 = vector.load %arg3[%c0_3, %c0_4] : memref<1x64xf32, #tpu.memory_space<vmem>>, vector<1x64xf32>
    %4 = vector.broadcast %3 : vector<1x64xf32> to vector<8x64xf32>
    %5 = arith.addf %2, %4 : vector<8x64xf32>
    %cst_5 = arith.constant 0.000000e+00 : f32
    %6 = vector.broadcast %cst_5 : f32 to vector<8x64xf32>
    %7 = arith.maximumf %5, %6 : vector<8x64xf32>
    %c0_6 = arith.constant 0 : index
    %c0_7 = arith.constant 0 : index
    %8 = vector.load %arg4[%c0_6, %c0_7] : memref<64x128xf32, #tpu.memory_space<vmem>>, vector<64x128xf32>
    %cst_8 = arith.constant dense<0.000000e+00> : vector<8x128xf32>
    %9 = tpu.matmul %7, %8, %cst_8 {dimension_numbers = #tpu.dot_dimension_numbers<[1], [0], [0], [1], [0, 0, 1, 1], [], []>} : vector<8x64xf32>, vector<64x128xf32>, vector<8x128xf32> -> vector<8x128xf32>
    %c0_9 = arith.constant 0 : index
    %c0_10 = arith.constant 0 : index
    %10 = vector.load %arg5[%c0_9, %c0_10] : memref<1x128xf32, #tpu.memory_space<vmem>>, vector<1x128xf32>
    %11 = vector.broadcast %10 : vector<1x128xf32> to vector<8x128xf32>
    %12 = arith.addf %9, %11 : vector<8x128xf32>
    %13 = tpu.iota {dimensions = array<i32: 1>} : vector<8x128xi32>
    %c16_i32 = arith.constant 16 : i32
    %14 = vector.broadcast %c16_i32 : i32 to vector<8x128xi32>
    %15 = arith.cmpi slt, %13, %14 : vector<8x128xi32>
    %cst_11 = arith.constant 0xFF800000 : f32
    %16 = vector.broadcast %cst_11 : f32 to vector<8x128xf32>
    %17 = arith.select %15, %12, %16 : vector<8x128xi1>, vector<8x128xf32>
    %cst_12 = arith.constant dense<0xFF800000> : vector<8xf32>
    %18 = vector.multi_reduction <maximumf>, %17, %cst_12 [1] : vector<8x128xf32> to vector<8xf32>
    %19 = vector.shape_cast %18 : vector<8xf32> to vector<8x1xf32>
    %20 = vector.broadcast %19 : vector<8x1xf32> to vector<8x128xf32>
    %21 = arith.subf %17, %20 : vector<8x128xf32>
    %22 = math.exp %21 : vector<8x128xf32>
    %cst_13 = arith.constant dense<0.000000e+00> : vector<8xf32>
    %23 = vector.multi_reduction <add>, %22, %cst_13 [1] : vector<8x128xf32> to vector<8xf32>
    %24 = vector.shape_cast %23 : vector<8xf32> to vector<8x1xf32>
    %25 = vector.broadcast %24 : vector<8x1xf32> to vector<8x128xf32>
    %26 = arith.divf %22, %25 : vector<8x128xf32>
    %27 = arith.select %15, %26, %12 : vector<8x128xi1>, vector<8x128xf32>
    %c0_14 = arith.constant 0 : index
    %c0_15 = arith.constant 0 : index
    %28 = vector.load %arg6[%c0_14, %c0_15] : memref<8x128xf32, #tpu.memory_space<vmem>>, vector<8x128xf32>
    tpu.vector_store %arg6[%c0_14, %c0_15], %27 {strides = array<i32>} : memref<8x128xf32, #tpu.memory_space<vmem>>, vector<8x128xf32>,
    return
  }
  func.func @transform_0(%arg0: i32) -> (i32, i32) {
    %c0_i32 = arith.constant 0 : i32
    %c0_i32_0 = arith.constant 0 : i32
    return %arg0, %c0_i32 : i32, i32
  }
  func.func @transform_1(%arg0: i32) -> (i32, i32) {
    %c0_i32 = arith.constant 0 : i32
    %c0_i32_0 = arith.constant 0 : i32
    %c0_i32_1 = arith.constant 0 : i32
    return %c0_i32, %c0_i32_0 : i32, i32
  }
  func.func @transform_2(%arg0: i32) -> (i32, i32) {
    %c0_i32 = arith.constant 0 : i32
    %c0_i32_0 = arith.constant 0 : i32
    %c0_i32_1 = arith.constant 0 : i32
    return %c0_i32, %c0_i32_0 : i32, i32
  }
  func.func @transform_3(%arg0: i32) -> (i32, i32) {
    %c0_i32 = arith.constant 0 : i32
    %c0_i32_0 = arith.constant 0 : i32
    %c0_i32_1 = arith.constant 0 : i32
    return %c0_i32, %c0_i32_0 : i32, i32
  }
  func.func @transform_4(%arg0: i32) -> (i32, i32) {
    %c0_i32 = arith.constant 0 : i32
    %c0_i32_0 = arith.constant 0 : i32
    %c0_i32_1 = arith.constant 0 : i32
    return %c0_i32, %c0_i32_0 : i32, i32
  }
  func.func @transform_5(%arg0: i32) -> (i32, i32) {
    %c0_i32 = arith.constant 0 : i32
    %c0_i32_0 = arith.constant 0 : i32
    return %arg0, %c0_i32 : i32, i32
  }
}

</mosaic_0001>

<bundles_post_ra>
// kernel: tpu_custom_call.1
= control target key start
LH: loop header
LB: loop body
LE: loop exit
PB: predicated region body
PF: predicated region fallthrough
CT: control target
= control target key end

     0   :  { %10 = vsyncpa [#allocation3], 0  ;;  %s357_s0 = inlined_call_operand.hbm [shape: f32[8,64], index: 0, kind: input, shape index: {}]   ;;  %s358_s1 = inlined_call_operand.hbm [shape: f32[64,64], index: 1, kind: input, shape index: {}]   ;;  %s359_s2 = inlined_call_operand.vmem [shape: f32[1,64], index: 2, kind: input, shape index: {}]   ;;  %s360_s3 = inlined_call_operand.hbm [shape: f32[64,128], index: 3, kind: input, shape index: {}]   ;;  %s361_s4 = inlined_call_operand.vmem [shape: f32[1,128], index: 4, kind: input, shape index: {}]   ;;  %s362_s5 = inlined_call_operand.hbm [shape: f32[8,128], index: 5, kind: output, shape index: {}]  }
   0x1   :  { %11 = vsyncpa [#allocation6], 0  ;;  %s28_s20 = sshll.u32 %s358_s1, 4  ;;  %s29_s20 = int_to_ptr.hbm [resolvable:$true] %s28_s20 }
   0x2   :  { %12 = vsyncpa [#allocation4], 0  ;;  %s301_s21 = smov [#allocation5]   ;;  %s18_s25 = sshll.u32 %s357_s0, 4  ;;  %s19_s25 = int_to_ptr.hbm [resolvable:$true] %s18_s25 }
   0x3   :  { %s30_s22 = sshll.u32 %s301_s21, 4  ;;  %s302_s26 = smov 128   ;;  %s31_s22 = int_to_ptr.vmem [resolvable:$true] %s30_s22 }
   0x4   :  { %s303_s27 = smov 8   ;;  %s304_s28 = smov [#allocation2]  }
   0x5   :  { %36 = dma.hbm_to_vmem [thread:$0]  %s29_s20, 1024, %s31_s22, [#allocation6], %s302_s26, %s302_s26, %s303_s27  }
   0x6   :  { %s20_s29 = sshll.u32 %s304_s28, 4  ;;  %s43_s7 = sshll.u32 %s360_s3, 4  ;;  %s21_s29 = int_to_ptr.vmem [resolvable:$true] %s20_s29  ;;  %s44_s7 = int_to_ptr.hbm [resolvable:$true] %s43_s7 }
   0x7   :  { %23 = dma.hbm_to_vmem [thread:$0]  %s19_s25, 128, %s21_s29, [#allocation3]  }
   0x8   :  { %s305_s1 = smov [#allocation7]  }
   0x9   :  { %s45_s8 = sshll.u32 %s305_s1, 4  ;;  %s46_s8 = int_to_ptr.vmem [resolvable:$true] %s45_s8 }
   0xa   :  { %51 = dma.hbm_to_vmem [thread:$0]  %s44_s7, 1024, %s46_s8, [#allocation6], %s302_s26, %s302_s26, %s303_s27  }
   0xb   :  { %295 = dma.done.wait [#allocation3], 128  }
   0xc   :  { %296 = vsyncadd [#allocation3], 4294967168 }
   0xd   :  { %297 = dma.done.wait [#allocation6], 2048  }
   0xe   :  { %298 = vsyncadd [#allocation6], 4294965248  ;;  %v74_v0 = vld [vmem:[#allocation5 + $0x38] sm:$0xff]  ;;  %v73_v1 = vld [vmem:[#allocation5 + $0x30] sm:$0xff]  ;;  %vm79_vm0 = vcmask 523264   ;;  %v139_v21 = vlaneseq  ;;  %s174_s13 = sshll.u32 %s362_s5, 4  ;;  %s175_s13 = int_to_ptr.hbm [resolvable:$true] %s174_s13 }
   0xf   :  { %91 = vmatpush.msra.mxu0 %v74_v0  ;;  %v72_v2 = vld [vmem:[#allocation5 + $0x28] sm:$0xff]  ;;  %v111_v3 = vld [vmem:[#allocation7 + $0x38] sm:$0xff]  ;;  %v110_v4 = vld [vmem:[#allocation7 + $0x30] sm:$0xff] }
  0x10   :  { %v71_v5 = vld [vmem:[#allocation5 + $0x20] sm:$0xff]  ;;  %127 = vmatpush.msra.mxu1 %v111_v3  ;;  %v109_v6 = vld [vmem:[#allocation7 + $0x28] sm:$0xff]  ;;  %v70_v7 = vld [vmem:[#allocation5 + $0x18] sm:$0xff]  ;;  %v140_v22 = vand.u32 127, %v139_v21 }
  0x11   :  { %92 = vmatpush.msra.mxu0 %v73_v1  ;;  %v108_v8 = vld [vmem:[#allocation7 + $0x20] sm:$0xff]  ;;  %v69_v9 = vld [vmem:[#allocation5 + $0x10] sm:$0xff]  ;;  %v107_v10 = vld [vmem:[#allocation7 + $0x18] sm:$0xff] }
  0x12   :  { %128 = vmatpush.msra.mxu1 %v110_v4  ;;  %v68_v11 = vld [vmem:[#allocation5 + $0x8] sm:$0xff]  ;;  %v67_v12 = vld [vmem:[#allocation5] sm:$0xff]  ;;  %v66_v13 = vld [vmem:[#allocation2] sm:$0xff]  ;;  %vm141_vm1 = vcmp.lt.s32.totalorder %v140_v22, 16 }
  0x13   :  { %93 = vmatpush.msra.mxu0 %v72_v2  ;;  %v106_v14 = vld [vmem:[#allocation7 + $0x10] sm:$0xff]  ;;  %v105_v15 = vld [vmem:[#allocation7 + $0x8] sm:$0xff]  ;;  %v104_v16 = vld [vmem:[#allocation7] sm:$0xff] }
  0x14   :  { %129 = vmatpush.msra.mxu1 %v109_v6  ;;  %v193_v17 = vld [vmem:[%s359_s2] ss:$0 sm:$0xff]  ;;  %s306_s2 = smov [#allocation8]  }
  0x15   :  { %94 = vmatpush.msra.mxu0 %v71_v5  ;;  %v194_v23 = vld [vmem:[%s361_s4] ss:$0 sm:$0xff]  ;;  %s172_s4 = sshll.u32 %s306_s2, 4  ;;  %s173_s4 = int_to_ptr.vmem [resolvable:$true] %s172_s4 }
  0x16   :  { %130 = vmatpush.msra.mxu1 %v108_v8 }
  0x17   :  { %95 = vmatpush.msra.mxu0 %v70_v7 }
  0x18   :  { %131 = vmatpush.msra.mxu1 %v107_v10 }
  0x19   :  { %96 = vmatpush.msra.mxu0 %v69_v9 }
  0x1a   :  { %132 = vmatpush.msra.mxu1 %v106_v14 }
  0x1b   :  { %97 = vmatpush.msra.mxu0 %v68_v11 }
  0x1c   :  { %133 = vmatpush.msra.mxu1 %v105_v15 }
  0x1d   :  { %98 = vmatpush.msra.mxu0 %v67_v12 }
  0x1e   :  { %185 = vmatmul.msk.f32.vlgmr.msra.gmra.mxu0 %vm79_vm0, %v66_v13  ;;  %134 = vmatpush.msra.mxu1 %v104_v16 }
  0x9b   :  { %v100_v18 = vpop.f32.mrf.mxu0 }
  0x9c   :  { %v101_v19 = vadd.f32 %v193_v17, %v100_v18 }
  0x9e   :  { %v103_v20 = vmax.f32 %v101_v19, 0.0 }
  0xa0   :  { %186 = vmatmul.msk.f32.vlgmr.msra.gmra.mxu1 %vm79_vm0, %v103_v20 }
 0x11d   :  { %v136_v24 = vpop.f32.mrf.mxu1 }
 0x11e   :  { %v137_v25 = vadd.f32 %v194_v23, %v136_v24 }
 0x120   :  { %v142_v26 = vsel %vm141_vm1, %v137_v25, -inf }
 0x121   :  { %143 = vmax.xlane.f32.xlu0 %v142_v26 }
 0x194   :  { %v144_v27 = vpop.xlane.xlu0 %143 }
 0x195   :  { %v145_v28 = vsub.f32 %v142_v26, %v144_v27 }
 0x197   :  { %v146_v29 = vmul.f32 1.442695, %v145_v28 }
 0x199   :  { %195 = vpow2.f32 %v146_v29 }
 0x19f   :  { %v196_v30 = vpop.eup %195 }
 0x1a0   :  { %148 = vadd.xlane.f32.xlu0 %v196_v30 }
 0x213   :  { %v149_v31 = vpop.xlane.xlu0 %148 }
 0x214   :  { %197 = vrcp.f32 %v149_v31  ;;  %v161_v35 = vand.u32 2147483648, %v149_v31  ;;  %v159_v37 = vand.u32 2147483647, %v149_v31  ;;  %vm155_vm3 = vweird.f32 %v149_v31 }
 0x216   :  { %v162_v39 = vor.u32 1.1754944e-38, %v161_v35  ;;  %vm160_vm5 = vcmp.eq.f32.partialorder %v159_v37, 8.507059e+37 }
 0x21a   :  { %v198_v32 = vpop.eup %197 }
 0x21b   :  { %v151_v33 = vmul.f32 %v198_v32, %v149_v31  ;;  %vm156_vm2 = vweird.f32 %v198_v32 }
 0x21c   :  { %vm157_vm4 = vmor %vm155_vm3, %vm156_vm2 }
 0x21d   :  { %v152_v34 = vsub.f32 1.0, %v151_v33 }
 0x21f   :  { %v153_v36 = vmul.f32 %v198_v32, %v152_v34 }
 0x221   :  { %v154_v38 = vadd.f32 %v198_v32, %v153_v36 }
 0x223   :  { %v158_v40 = vsel %vm157_vm4, %v198_v32, %v154_v38 }
 0x224   :  { %v163_v41 = vsel %vm160_vm5, %v162_v39, %v158_v40 }
 0x225   :  { %v164_v42 = vmul.f32 %v196_v30, %v163_v41 }
 0x227   :  { %v165_v43 = vsel %vm141_vm1, %v164_v42, %v137_v25 }
 0x228   :  { %166 = vst [vmem:[#allocation8] sm:$0xff] %v165_v43 }
 0x229   :  { %177 = dma.vmem_to_hbm [thread:$0]  %s173_s4, 128, %s175_s13, [#allocation4]  }
 0x22a   :  { %299 = dma.done.wait [#allocation4], 128  }
 0x22b   :  { %300 = vsyncadd [#allocation4], 4294967168 }
 0x22c   :  { %182 = vsyncpa [#allocation3], 1 }
 0x22d   :  { %183 = vsyncpa [#allocation6], 1 }
 0x22e   :  { %184 = vsyncpa [#allocation4], 1 }

</bundles_post_ra>
